<compile_context>
chip_gen: v5e
topology: v5e:2x2
jax: 0.10.0
libtpu: 0.0.40
codegen_flags: <defaults>
</compile_context>

<pallas_src>
import jax
import jax.numpy as jnp
from jax import lax
from jax.experimental import pallas as pl
from jax.experimental.pallas import tpu as pltpu


def _masked_gram_kernel(x_ref, m_ref, g_ref, acc_ref):
    """One (b, k) grid step: accumulate (x*m) @ (x*m)^T into f32 VMEM scratch."""
    k = pl.program_id(1)

    @pl.when(k == 0)
    def _init():
        acc_ref[...] = jnp.zeros_like(acc_ref)

    x = x_ref[0]                      # (C, K_BLK), input dtype (bf16/f32)
    m = m_ref[0]                      # (Cm, K_BLK), Cm in {1, C}, same dtype as x
    xm = x * m                        # (1, K_BLK) broadcasts against (C, K_BLK) for free
    # NT contraction over the lane axis -> (C, C) on the MXU; f32 accumulation.
    acc_ref[...] += lax.dot_general(
        xm, xm,
        dimension_numbers=(((1,), (1,)), ((), ())),
        preferred_element_type=jnp.float32,
    )

    @pl.when(k == pl.num_programs(1) - 1)
    def _finalize():
        g_ref[0] = acc_ref[...]


def _vmem_budget_bytes():
    """Generation-aware scoped-VMEM budget for this kernel."""
    try:
        cap = pltpu.get_tpu_info().vmem_capacity_bytes  # 128 MiB v5e/v6e, 64 MiB v7x
    except Exception:
        cap = 64 * 1024 * 1024
    # At most a quarter of physical VMEM; never below the v5e 16 MiB default scope.
    return int(max(16 * 1024 * 1024, min(cap // 4, 32 * 1024 * 1024)))


def _pick_k_block(K, C, Cm, itemsize, budget_bytes):
    """Largest K tile (multiple of 128) whose working set fits the VMEM budget."""
    # Per-lane-column cost: x double buffer + mask double buffer + xm temporary.
    per_col = (2 * C + 2 * Cm + C) * itemsize
    fixed = 3 * C * C * 4            # f32 accumulator + double-buffered (C, C) output
    blk = max(budget_bytes - fixed, per_col * 128) // per_col
    blk = max(128, (blk // 128) * 128)
    blk = min(blk, 8192)             # >=512-wide tiles already reach ~85% of HBM BW
    k_ceil = pl.cdiv(K, 128) * 128
    return min(blk, k_ceil)


def masked_gram(x, mask):
    """Fused masked Gram matrices via a Pallas TPU kernel.

    x:    (B, C, H, W)
    mask: rank-4; batch/channel dims either 1 or matching x; spatial dims match x.
    Returns: G (B, C, C) float32 (un-normalized),
             mask_sum () float32 = sum of mask expanded to x.shape.
    """
    B, C, H, W = x.shape
    K = H * W
    assert mask.ndim == 4
    Bm, Cm, Hm, Wm = mask.shape
    assert Bm in (1, B) and Cm in (1, C) and Hm == H and Wm == W

    # sum(mask.expand_as(x)) == sum(mask) * broadcast factor; trivial -> do it in XLA.
    mask_sum = jnp.sum(mask.astype(jnp.float32)) * float((B // Bm) * (C // Cm))

    itemsize = jnp.dtype(x.dtype).itemsize
    budget = _vmem_budget_bytes()
    k_blk = _pick_k_block(K, C, Cm, itemsize, budget)
    K_pad = pl.cdiv(K, k_blk) * k_blk
    num_k = K_pad // k_blk

    xr = x.reshape(B, C, K)
    # Binary masks are exact in x.dtype; soft masks lose at most what the bf16 MXU
    # multiply would lose anyway.
    mr = mask.astype(x.dtype).reshape(Bm, Cm, K)
    if K_pad != K:
        xr = jnp.pad(xr, ((0, 0), (0, 0), (0, K_pad - K)))
        mr = jnp.pad(mr, ((0, 0), (0, 0), (0, K_pad - K)))

    x_map = lambda b, k: (b, 0, k)
    m_map = (lambda b, k: (b, 0, k)) if Bm > 1 else (lambda b, k: (0, 0, k))
    # TODO(synk): when Bm == 1 and Cm == C and B is large, the full (C, K) mask is
    # re-streamed per image; pre-multiplying it into x (or keeping it VMEM-resident)
    # would save that HBM traffic.

    G = pl.pallas_call(
        _masked_gram_kernel,
        out_shape=jax.ShapeDtypeStruct((B, C, C), jnp.float32),
        grid_spec=pltpu.PrefetchScalarGridSpec(
            num_scalar_prefetch=0,
            grid=(B, num_k),
            in_specs=[
                pl.BlockSpec((1, C, k_blk), x_map),
                pl.BlockSpec((1, Cm, k_blk), m_map),
            ],
            out_specs=pl.BlockSpec((1, C, C), lambda b, k: (b, 0, 0)),
            scratch_shapes=[pltpu.VMEM((C, C), jnp.float32)],
        ),
        compiler_params=pltpu.CompilerParams(
            # TODO(synk): with B == 1 on v7x, a second parallel axis over C row
            # blocks would keep both TensorCores busy when MXU-bound.
            dimension_semantics=("parallel", "arbitrary"),
            vmem_limit_bytes=budget,
        ),
        cost_estimate=pl.CostEstimate(
            flops=2 * B * C * C * K_pad + B * C * K_pad,
            transcendentals=0,
            bytes_accessed=(B * C * K + Bm * Cm * K) * itemsize + B * C * C * 4,
        ),
    )(xr, mr)
    return G, mask_sum


def style_loss_pass1(x, mask, target, weight):
    """'loss'-mode forward of StyleLossPass1: returns (input, weighted MSE loss)."""
    G, mask_sum = masked_gram(x, mask)
    denom = jnp.where(mask_sum > 0, mask_sum, jnp.float32(1.0))  # guard all-zero mask
    G = G / denom
    diff = G - target.astype(jnp.float32)
    loss = jnp.mean(diff * diff) * jnp.asarray(weight, jnp.float32)
    # TODO(synk): the PyTorch module registers a backward hook that masks grad(input);
    # gradients are out of scope for this forward kernel.
    return x, loss


# ---------------- pure-JAX references ----------------

def _gram_ref(x, mask):
    B, C, H, W = x.shape
    m = jnp.broadcast_to(mask, x.shape).astype(jnp.float32)
    xm = (x.astype(jnp.float32) * m).reshape(B, C, H * W)
    return jnp.einsum('bik,bjk->bij', xm, xm), jnp.sum(m)


def style_loss_ref(x, mask, target, weight):
    G, msum = _gram_ref(x, mask)
    G = G / msum
    return jnp.asarray(weight, jnp.float32) * jnp.mean((G - target) ** 2)


if __name__ == "__main__":
    key = jax.random.PRNGKey(0)
    B, C, H, W = 2, 4, 16, 16
    k_content, k_style = jax.random.split(key)
    content_fm = jax.random.normal(k_content, (B, C, H, W), dtype=jnp.float32)
    style_fm = jax.random.normal(k_style, (B, C, H, W), dtype=jnp.float32)
    # Binary spatial mask, broadcast over batch/channel (like mask.expand_as(fm)).
    mask = jnp.zeros((1, 1, H, W), jnp.float32).at[:, :, 4:12, 4:12].set(1.0)
    weight = 0.5

    # 'capture_style' step: masked style Gram matrix becomes the target.
    # TODO(synk): match_fm's per-pixel patch matching (argmax over conv score maps)
    # is offline preprocessing in the PyTorch module; the style feature map is used
    # directly here.
    target_G, style_msum = masked_gram(style_fm, mask)
    target = jax.block_until_ready(target_G / style_msum)

    # Direct check of the Gram kernel against an einsum reference.
    G_ref, msum_ref_val = _gram_ref(style_fm, mask)
    assert jnp.allclose(target_G, G_ref, rtol=1e-3, atol=1e-2), "gram mismatch"
    assert jnp.allclose(style_msum, msum_ref_val, rtol=1e-6, atol=1e-3), "mask-sum mismatch"

    # 'loss' step.
    out, loss = style_loss_pass1(content_fm, mask, target, weight)
    out = jax.block_until_ready(out)
    loss = jax.block_until_ready(loss)

    ref = style_loss_ref(content_fm, mask, target, weight)
    assert out.shape == content_fm.shape
    assert jnp.allclose(out, content_fm), "forward must return input unchanged"
    assert jnp.allclose(loss, ref, rtol=1e-3, atol=1e-5), (loss, ref)
    print("KERNEL_OK")
</pallas_src>

<mosaic_0001>
module attributes {stable_mosaic.version = 11 : i64} {
  func.func @_masked_gram_kernel(%arg0: i32, %arg1: i32, %arg2: memref<1x4x256xf32, #tpu.memory_space<vmem>>, %arg3: memref<1x1x256xf32, #tpu.memory_space<vmem>>, %arg4: memref<1x4x4xf32, #tpu.memory_space<vmem>>, %arg5: memref<4x4xf32, #tpu.memory_space<vmem>>) attributes {dimension_semantics = [#tpu.dimension_semantics<parallel>, #tpu.dimension_semantics<arbitrary>], iteration_bounds = array<i64: 2, 1>, scalar_prefetch = 0 : i64, scratch_operands = 1 : i64, tpu.core_type = #tpu.core_type<tc>, window_params = [{transform_indices = @transform_0, window_bounds = array<i64: 1, 4, 256>}, {transform_indices = @transform_1, window_bounds = array<i64: 1, 1, 256>}, {transform_indices = @transform_2, window_bounds = array<i64: 1, 4, 4>}]} {
    %c0_i32 = arith.constant 0 : i32
    %0 = arith.cmpi eq, %arg1, %c0_i32 : i32
    %1 = arith.extui %0 : i1 to i32
    %c0_i32_0 = arith.constant 0 : i32
    %2 = arith.cmpi ne, %1, %c0_i32_0 : i32
    scf.if %2 {
      %cst_12 = arith.constant 0.000000e+00 : f32
      %16 = vector.broadcast %cst_12 : f32 to vector<4x4xf32>
      %c0_13 = arith.constant 0 : index
      %c0_14 = arith.constant 0 : index
      %17 = vector.load %arg5[%c0_13, %c0_14] : memref<4x4xf32, #tpu.memory_space<vmem>>, vector<4x4xf32>
      tpu.vector_store %arg5[%c0_13, %c0_14], %16 {strides = array<i32>} : memref<4x4xf32, #tpu.memory_space<vmem>>, vector<4x4xf32>,
    } else {
    }
    %c0 = arith.constant 0 : index
    %c0_1 = arith.constant 0 : index
    %c0_2 = arith.constant 0 : index
    %3 = vector.load %arg2[%c0, %c0_1, %c0_2] : memref<1x4x256xf32, #tpu.memory_space<vmem>>, vector<1x4x256xf32>
    %4 = vector.shape_cast %3 : vector<1x4x256xf32> to vector<4x256xf32>
    %c0_3 = arith.constant 0 : index
    %c0_4 = arith.constant 0 : index
    %c0_5 = arith.constant 0 : index
    %5 = vector.load %arg3[%c0_3, %c0_4, %c0_5] : memref<1x1x256xf32, #tpu.memory_space<vmem>>, vector<1x1x256xf32>
    %6 = vector.shape_cast %5 : vector<1x1x256xf32> to vector<1x256xf32>
    %7 = vector.broadcast %6 : vector<1x256xf32> to vector<4x256xf32>
    %8 = arith.mulf %4, %7 : vector<4x256xf32>
    %c0_6 = arith.constant 0 : index
    %c0_7 = arith.constant 0 : index
    %9 = vector.load %arg5[%c0_6, %c0_7] : memref<4x4xf32, #tpu.memory_space<vmem>>, vector<4x4xf32>
    %cst = arith.constant dense<0.000000e+00> : vector<4x4xf32>
    %10 = tpu.matmul %8, %8, %cst {dimension_numbers = #tpu.dot_dimension_numbers<[1], [1], [0], [0], [0, 0, 1, 0], [], []>} : vector<4x256xf32>, vector<4x256xf32>, vector<4x4xf32> -> vector<4x4xf32>
    %11 = arith.addf %9, %10 : vector<4x4xf32>
    %c0_8 = arith.constant 0 : index
    %c0_9 = arith.constant 0 : index
    %12 = vector.load %arg5[%c0_8, %c0_9] : memref<4x4xf32, #tpu.memory_space<vmem>>, vector<4x4xf32>
    tpu.vector_store %arg5[%c0_8, %c0_9], %11 {strides = array<i32>} : memref<4x4xf32, #tpu.memory_space<vmem>>, vector<4x4xf32>,
    %c0_i32_10 = arith.constant 0 : i32
    %13 = arith.cmpi eq, %arg1, %c0_i32_10 : i32
    %14 = arith.extui %13 : i1 to i32
    %c0_i32_11 = arith.constant 0 : i32
    %15 = arith.cmpi ne, %14, %c0_i32_11 : i32
    scf.if %15 {
      %c0_12 = arith.constant 0 : index
      %c0_13 = arith.constant 0 : index
      %16 = vector.load %arg5[%c0_12, %c0_13] : memref<4x4xf32, #tpu.memory_space<vmem>>, vector<4x4xf32>
      %c0_14 = arith.constant 0 : index
      %c0_15 = arith.constant 0 : index
      %c0_16 = arith.constant 0 : index
      %17 = vector.load %arg4[%c0_14, %c0_15, %c0_16] : memref<1x4x4xf32, #tpu.memory_space<vmem>>, vector<1x4x4xf32>
      %18 = vector.shape_cast %17 : vector<1x4x4xf32> to vector<4x4xf32>
      %19 = vector.shape_cast %16 : vector<4x4xf32> to vector<1x4x4xf32>
      tpu.vector_store %arg4[%c0_14, %c0_15, %c0_16], %19 {strides = array<i32>} : memref<1x4x4xf32, #tpu.memory_space<vmem>>, vector<1x4x4xf32>,
    } else {
    }
    return
  }
  func.func @transform_0(%arg0: i32, %arg1: i32) -> (i32, i32, i32) {
    %c0_i32 = arith.constant 0 : i32
    %c0_i32_0 = arith.constant 0 : i32
    return %arg0, %c0_i32, %arg1 : i32, i32, i32
  }
  func.func @transform_1(%arg0: i32, %arg1: i32) -> (i32, i32, i32) {
    %c0_i32 = arith.constant 0 : i32
    %c0_i32_0 = arith.constant 0 : i32
    %c0_i32_1 = arith.constant 0 : i32
    return %c0_i32, %c0_i32_0, %arg1 : i32, i32, i32
  }
  func.func @transform_2(%arg0: i32, %arg1: i32) -> (i32, i32, i32) {
    %c0_i32 = arith.constant 0 : i32
    %c0_i32_0 = arith.constant 0 : i32
    %c0_i32_1 = arith.constant 0 : i32
    return %arg0, %c0_i32, %c0_i32_0 : i32, i32, i32
  }
}

</mosaic_0001>

<bundles_post_ra>
// kernel: tpu_custom_call.1
= control target key start
LH: loop header
LB: loop body
LE: loop exit
PB: predicated region body
PF: predicated region fallthrough
CT: control target
= control target key end

     0   :  { %7 = vsyncpa [#allocation4], 0  ;;  %s796_s0 = inlined_call_operand.hbm [shape: f32[2,4,256], index: 0, kind: input, shape index: {}]   ;;  %s797_s1 = inlined_call_operand.hbm [shape: f32[1,1,256], index: 1, kind: input, shape index: {}]   ;;  %s798_s2 = inlined_call_operand.hbm [shape: f32[2,4,4], index: 2, kind: output, shape index: {}]  }
   0x1   :  { %9 = vsyncpa [#allocation4 + $0x1], 0 }
   0x2   :  { %10 = vsyncpa [#allocation7], 0 }
   0x3   :  { %11 = vsyncpa [#allocation5], 0 }
   0x4   :  { %13 = vsyncpa [#allocation5 + $0x1], 0  ;;  %s643_s9 = smov 0   ;;  %s645_s10 = smov 0  }
   0x5   :  { %s647_s11 = smov 0   ;;  %s649_s12 = smov 0  }
   0x6   :  { %s651_s13 = smov 0   ;;  %s653_s14 = smov 0  }
   0x7 LB: > { %s387_s15 = sadd.s32 4294967295, %s624_s14   ;;  %s388_s16 = sadd.s32 4294967294, %s624_s14   ;;  %s624_s14 = sphi %s653_s14, %s19_s14   ;;  %s620_s13 = sphi %s651_s13, %s810_s13   ;;  %s616_s12 = sphi %s649_s12, %s809_s12   ;;  %s612_s11 = sphi %s647_s11, %s808_s11   ;;  %s608_s10 = sphi %s645_s10, %s807_s10   ;;  %s604_s9 = sphi %s643_s9, %s806_s9  }
   0x8   : > { %p53_p0 = scmp.ne.s32.totalorder %s608_s10, %s604_s9  ;;  %p677_p1 = scmp.eq.s32.totalorder %s387_s15, 0 }
   0x9   : > { %p681_p2 = scmp.eq.s32.totalorder %s387_s15, 1  ;;  %p109_p3 = scmp.eq.s32.totalorder %s388_s16, 1 }
   0xa   : > { %p687_p4 = por %p677_p1, %p53_p0  ;;  %p389_p5 = scmp.ge.s32.totalorder %s624_s14, 1 }
   0xb   : > { %p692_p6 = por %p109_p3, %p53_p0  ;;  %p116_p7 = scmp.lt.s32.totalorder %s624_s14, 3 }
   0xc   : > { %s130_s23 = sshll.u32 %s797_s1, 4  ;;  %p391_p9 = scmp.ge.s32.totalorder %s624_s14, 2  ;;  %s131_s23 = int_to_ptr.hbm [resolvable:$true] %s130_s23 }
   0xd   : > { %p700_p8 = pnand %p389_p5, %p116_p7  ;;  %s626_s25 = smov [#allocation6]  }
   0xe   : > { %s132_s26 = sshll.u32 %s626_s25, 4  ;;  %s31_s27 = sadd.s32 1, %s620_s13  ;;  %s133_s26 = int_to_ptr.vmem [resolvable:$true] %s132_s26 }
   0xf   : > { %p412_p10 = pneg %p700_p8  ;;  %p33_p12 = scmp.ge.s32.totalorder %s31_s27, 2 }
  0x10   : > { %s40_s28 = sadd.s32 1, %s612_s11  ;;  %p47_p13 = scmp.ne.s32.totalorder %s612_s11, %s608_s10 }
  0x11   : > { %p413_p11 = pnand %p412_p10, %p677_p1  ;;  %p48_p0 = scmp.eq.s32.totalorder %s624_s14, 0 }
  0x12   : > { %s812_s27 = smov (%p33_p12, %s31_s27), 0  ;;  %p722_p5 = por %p681_p2, %p47_p13 }
  0x13   : > { %415 = dma.hbm_to_vmem [thread:$0]  (!%p413_p11), %s131_s23, 32, %s133_s26, [#allocation7]  }
  0x14   : > { %p716_p3 = por %p48_p0, %p47_p13  ;;  %s35_s3 = ssub.s32 %s620_s13, %s812_s27 }
  0x15   : > { %p425_p7 = scmp.lt.s32.totalorder %s624_s14, 2  ;;  %p38_p10 = scmp.eq.s32.totalorder %s35_s3, 0 }
  0x16   : > { %s143_s4 = sand.u32 1, %s612_s11   ;;  %s403_s7 = sshll.u32 %s620_s13, 3 }
  0x17   : > { %s392_s5 = sshll.u32 %s143_s4, 3  ;;  %s154_s16 = scalar_lea.hbm %s796_s0, %s403_s7 }
  0x18   : > { %s731_s6 = scalar_select %p38_p10, %s612_s11, %s40_s28  }
  0x19   : > { %s147_s21 = scalar_lea.vmem [#allocation3], %s392_s5  ;;  %s156_s18 = sshll.u32 %s154_s16, 4  ;;  %s157_s18 = int_to_ptr.hbm [resolvable:$true] %s156_s18 }
  0x1a   : > { %s158_s22 = sshll.u32 %s147_s21, 4  ;;  %p417_p2 = pnand %p425_p7, %p716_p3  ;;  %s159_s22 = int_to_ptr.vmem [resolvable:$true] %s158_s22 }
  0x1b   : > { %s144_s23 = scalar_lea.sflag [#allocation4], %s143_s4  ;;  %167 = sbr.rel (%p700_p8) target bundleno = 203 (0xcb), region = 28 }
  0x1c   : > { %419 = dma.hbm_to_vmem [thread:$0]  (!%p417_p2), %s157_s18, 128, %s159_s22, %s144_s23  }
  0x1d   : > { %s742_s25 = sand.u32 (!%p700_p8), 1, %s608_s10  }
  0x1e   : > { %s396_s26 = sshll.u32 (!%p700_p8), %s742_s25, 3  ;;  %s170_s28 = scalar_lea.sflag (!%p700_p8), [#allocation4], %s742_s25 }
  0x1f   : > { %s173_s3 = scalar_lea.vmem (!%p700_p8), [#allocation3], %s396_s26 }
  0x20   : > { %591 = dma.done.wait (%p687_p4), %s170_s28, 128  }
  0x21   : > { %593 = vsyncadd (%p687_p4), %s170_s28, 4294967168 }
  0x22   : > { %595 = dma.done.wait (%p677_p1), [#allocation7], 32  }
  0x23   : > { %597 = vsyncadd (%p677_p1), [#allocation7], 4294967264  ;;  %v209_v0 = vld [vmem:[#allocation6] sm:$0x3]  ;;  %vm214_vm0 = vcmask 1043456   ;;  %v208_v3 = vld [vmem:[%s173_s3] sm:$0xff] }
  0x24   : > { %v211_v1 = vperm.slane %v209_v0, 0  ;;  %v212_v2 = vperm.slane %v209_v0, 1  ;;  %vm206_vm1 = vcmask 27648   ;;  %v627_v11 = vmov 0.0   ;;  %s398_s17 = sshll.u32 %s742_s25, 2  ;;  %s400_s19 = sshll.u32 %s616_s12, 2 }
  0x25   : > { %207 = vst.msk [vmem:[#allocation2] sm:$0xf] %vm206_vm1, %v627_v11  ;;  %s289_s4 = scalar_lea.hbm %s798_s2, %s400_s19  ;;  %s199_s5 = scalar_lea.vmem [#allocation8], %s398_s17 }
  0x26   : > { %v213_v4 = vrot.slane %v212_v2, 4  ;;  %s291_s7 = sshll.u32 %s199_s5, 4  ;;  %s293_s8 = sshll.u32 %s289_s4, 4  ;;  %s292_s7 = int_to_ptr.vmem [resolvable:$true] %s291_s7  ;;  %s294_s8 = int_to_ptr.hbm [resolvable:$true] %s293_s8 }
  0x27   : > { %s279_s15 = scalar_lea.sflag [#allocation5], %s742_s25  ;;  %s552_s16 = sshra.s32 %s294_s8, 4  ;;  %s553_s16 = int_to_ptr.hbm [resolvable:$true] %s552_s16 }
  0x28   : > { %v215_v5 = vsel %vm214_vm0, %v211_v1, %v213_v4  ;;  %s554_s12 = scalar_lea.hbm %s553_s16, 4  ;;  %s558_s18 = scalar_lea.hbm %s798_s2, 8 }
  0x29   : > { %v217_v6 = vmul.f32 %v215_v5, %v208_v3  ;;  %p555_p1 = scmp.ne.s32.totalorder %s553_s16, %s554_s12  ;;  %p559_p11 = scmp.lt.s32.totalorder %s553_s16, %s798_s2 }
  0x2a   : > { %p560_p12 = scmp.lt.s32.totalorder %s558_s18, %s554_s12 }
  0x2b   : > { %220 = vst [vmem:[#allocation1] ss:$2 sm:$0xff] %v217_v6  ;;  %p556_p4 = pnand %p555_p1, %p722_p5 }
  0x2c   : > { %v218_v13 = vld [vmem:[#allocation2] sm:$0xf]  ;;  %p561_p13 = por %p560_p12, %p559_p11 }
  0x2d   : > { %p557_p8 = pneg %p556_p4 }
  0x2f   : > { %p562_p0 = pnand %p561_p13, %p557_p8 }
  0x32   : > { %v221_v7 = vld.sshfl [vmem:[#allocation1] sm:$0xff pattern:$0x75316420]  ;;  %v222_v8 = vld.sshfl [vmem:[#allocation1 + $0x8] sm:$0xff pattern:$0x75316420] }
  0x33   : > { %225 = vst [vmem:[#allocation1] ss:$2 sm:$0xff] %v217_v6 }
  0x3a   : > { %v226_v9 = vld.sshfl [vmem:[#allocation1] sm:$0xff pattern:$0x75316420]  ;;  %v227_v10 = vld.sshfl [vmem:[#allocation1 + $0x8] sm:$0xff pattern:$0x75316420] }
  0x3b   : > { %245 = vmatpush.xpose.msra.mxu0 %v226_v9  ;;  %265 = vmatpush.xpose.msra.mxu1 %v227_v10 }
  0x3e   : > { %246 = vmatmul.f32.vlgmr.msra.gmra.mxu0 %v221_v7  ;;  %266 = vmatmul.f32.vlgmr.msra.gmra.mxu1 %v222_v8 }
  0xbb   : > { %v247_v12 = vpop.f32.mrf.mxu0  ;;  %v267_v14 = vpop.f32.mrf.mxu1 }
  0xbc   : > { %v268_v15 = vadd.f32 %v267_v14, %v247_v12 }
  0xbe   : > { %v270_v16 = vadd.f32 %v268_v15, %v218_v13 }
  0xc0   : > { %272 = vst.msk [vmem:[#allocation2] sm:$0xf] %vm206_vm1, %v270_v16 }
  0xc7   : > { %v276_v17 = vld [vmem:[#allocation2] sm:$0xf] }
  0xc8   : > { %277 = vst.msk [vmem:[%s199_s5] sm:$0xf] %vm206_vm1, %v276_v17 }
  0xc9   : > { %565 = shalt.err (!%p562_p0)
}
  0xca   : > { %410 = dma.vmem_to_hbm [thread:$0]  (%p722_p5), %s292_s7, 64, %s294_s8, %s279_s15  }
  0xcb PF: > { %s305_s25 = sand.u32 1, %s604_s9   ;;  %p421_p3 = pnand %p391_p9, %p692_p6 }
  0xcc   : > { %s306_s28 = scalar_lea.sflag [#allocation5], %s305_s25 }
  0xcd   : > { %p422_p7 = pneg %p421_p3 }
  0xcf   : > { %599 = dma.done.wait (%p422_p7), %s306_s28, 64  }
  0xd0   : > { %601 = vsyncadd (%p422_p7), %s306_s28, 4294967232  ;;  %s19_s14 = sadd.s32 1, %s624_s14   ;;  %s806_s9 = smov %s608_s10 }
  0xd1   : > { %p16_p10 = scmp.ge.s32.totalorder %s19_s14, 4   ;;  %s807_s10 = smov %s612_s11 }
  0xd2   : > { %s808_s11 = smov %s731_s6  ;;  %s809_s12 = smov %s620_s13 }
  0xd3   : > { %s810_s13 = smov %s812_s27  ;;  %18 = sbr.rel (!%p16_p10) target bundleno = 7 (0x7), region = 86 }
  0xd8   :  { %312 = vsyncpa [#allocation4], 1 }
  0xd9   :  { %314 = vsyncpa [#allocation4 + $0x1], 1 }
  0xda   :  { %315 = vsyncpa [#allocation7], 1 }
  0xdb   :  { %316 = vsyncpa [#allocation5], 1 }
  0xdc   :  { %318 = vsyncpa [#allocation5 + $0x1], 1 }

</bundles_post_ra>
